<compile_context>
chip_gen: v7x
topology: tpu7x:2x2x1
jax: 0.10.0
libtpu: 0.0.40
codegen_flags: <defaults>
</compile_context>

<pallas_src>
import math

import jax
import jax.numpy as jnp
from jax import lax
from jax.experimental import pallas as pl
from jax.experimental.pallas import tpu as pltpu

# ---- module hyper-parameters (small, consistent with the nn.Module) ----------
B, T, D_IN = 2, 8, 32
NUM_HEADS, NUM_KV_GROUPS = 4, 2
HEAD_DIM = 16
D_OUT = NUM_HEADS * HEAD_DIM             # 64
GROUP_SIZE = NUM_HEADS // NUM_KV_GROUPS  # 2
KV_DIM = NUM_KV_GROUPS * HEAD_DIM        # 32


def _tensorcores_per_chip():
    """2 on v7x (2 TCs/chip), 1 on v5e/v6e; conservative fallback of 1."""
    try:
        kind = jax.devices()[0].device_kind.lower()
        if "v7" in kind or "7x" in kind:
            return 2
    except Exception:
        pass
    return 1


def _rot_half_matrix(dim):
    """P such that (row @ P) == concat(-row[d/2:], row[:d/2])."""
    half = dim // 2
    eye = jnp.eye(half, dtype=jnp.float32)
    zeros = jnp.zeros((half, half), jnp.float32)
    top = jnp.concatenate([zeros, eye], axis=1)
    bot = jnp.concatenate([-eye, zeros], axis=1)
    return jnp.concatenate([top, bot], axis=0)        # (dim, dim)


def prepare_constants(wq, wk, cos, sin, mask_bool, batch_block):
    """Host-side one-time prep: rotate-half folded weights, tiled RoPE tables
    (scale folded into the Q tables), and the additive stacked mask."""
    scale = 1.0 / math.sqrt(HEAD_DIM)
    p_head = _rot_half_matrix(HEAD_DIM)
    p_q = jnp.kron(jnp.eye(NUM_HEADS, dtype=jnp.float32), p_head)      # (D_OUT, D_OUT)
    p_k = jnp.kron(jnp.eye(NUM_KV_GROUPS, dtype=jnp.float32), p_head)  # (KV_DIM, KV_DIM)
    wq_rot = p_q.T @ wq                                                # (D_OUT, D_IN)
    wk_rot = p_k.T @ wk                                                # (KV_DIM, D_IN)

    cos_q = jnp.tile(jnp.tile(cos, (1, NUM_HEADS)), (batch_block, 1)) * scale
    sin_q = jnp.tile(jnp.tile(sin, (1, NUM_HEADS)), (batch_block, 1)) * scale
    cos_k = jnp.tile(jnp.tile(cos, (1, NUM_KV_GROUPS)), (batch_block, 1))
    sin_k = jnp.tile(jnp.tile(sin, (1, NUM_KV_GROUPS)), (batch_block, 1))

    mask_add = jnp.where(mask_bool, jnp.float32(-1e30), jnp.float32(0.0))
    mask_add = jnp.tile(mask_add, (GROUP_SIZE, 1))                     # (GS*T, T)
    return wq_rot, wk_rot, cos_q, sin_q, cos_k, sin_k, mask_add


def _dotT(a, b):
    """a (m,k) x b (n,k) -> (m,n): contract trailing dims, fp32 accumulate.
    MXU consumes either orientation; avoids tracing an XLU transpose."""
    return lax.dot_general(a, b, (((1,), (1,)), ((), ())),
                           preferred_element_type=jnp.float32)


def _make_kernel(bb):
    """Kernel handling `bb` batch elements per grid step (static)."""

    def gqa_kernel(x_ref, wq_ref, wqr_ref, wk_ref, wkr_ref, wv_ref, wo_ref,
                   cosq_ref, sinq_ref, cosk_ref, sink_ref, mask_ref, o_ref):
        x = x_ref[...].reshape(bb * T, D_IN)           # batch folded into rows

        # Projections (5 matmuls on (bb*T, D_IN) rows).
        q = _dotT(x, wq_ref[...])                      # (bb*T, D_OUT)
        qr = _dotT(x, wqr_ref[...])                    # rotate-half(q) via folded weights
        k = _dotT(x, wk_ref[...])                      # (bb*T, KV_DIM)
        kr = _dotT(x, wkr_ref[...])
        v = _dotT(x, wv_ref[...])

        # RoPE as full-width fused mul-adds (softmax scale folded into Q tables).
        q = q * cosq_ref[...] + qr * sinq_ref[...]
        k = k * cosk_ref[...] + kr * sink_ref[...]

        mask_add = mask_ref[...]                       # (GS*T, T), 0 / -1e30

        ctx_rows = []
        for b in range(bb):                            # static loop
            r0 = b * T
            ctx_heads = []
            for g in range(NUM_KV_GROUPS):             # static loop
                c0 = g * HEAD_DIM
                kh = k[r0:r0 + T, c0:c0 + HEAD_DIM]    # (T, HD)
                vh = v[r0:r0 + T, c0:c0 + HEAD_DIM]    # (T, HD)
                # Stack this group's GROUP_SIZE query heads along rows.
                qs = jnp.concatenate(
                    [q[r0:r0 + T,
                       (g * GROUP_SIZE + j) * HEAD_DIM:
                       (g * GROUP_SIZE + j + 1) * HEAD_DIM]
                     for j in range(GROUP_SIZE)], axis=0)     # (GS*T, HD)

                s = _dotT(qs, kh) + mask_add                  # (GS*T, T)
                m = jnp.max(s, axis=-1, keepdims=True)
                p = jnp.exp(s - m)
                w = p / jnp.sum(p, axis=-1, keepdims=True)
                ctx = jnp.dot(w, vh,
                              preferred_element_type=jnp.float32)  # (GS*T, HD)
                ctx_heads.extend(ctx[j * T:(j + 1) * T]
                                 for j in range(GROUP_SIZE))
            ctx_rows.append(jnp.concatenate(ctx_heads, axis=1))     # (T, D_OUT)

        ctx_all = ctx_rows[0] if bb == 1 else jnp.concatenate(ctx_rows, axis=0)
        out = _dotT(ctx_all, wo_ref[...])                           # (bb*T, D_OUT)
        o_ref[...] = out.reshape(bb, T, D_OUT).astype(o_ref.dtype)

    return gqa_kernel


def make_gqa_call(batch_block):
    assert B % batch_block == 0
    bb = batch_block
    kernel = _make_kernel(bb)
    grid = (B // bb,)

    @jax.jit
    def gqa_pallas(x, wq, wq_rot, wk, wk_rot, wv, wo,
                   cos_q, sin_q, cos_k, sin_k, mask_add):
        return pl.pallas_call(
            kernel,
            out_shape=jax.ShapeDtypeStruct((B, T, D_OUT), x.dtype),
            grid_spec=pltpu.PrefetchScalarGridSpec(
                num_scalar_prefetch=0,
                grid=grid,
                in_specs=[
                    pl.BlockSpec((bb, T, D_IN), lambda i: (i, 0, 0)),   # x
                    pl.BlockSpec((D_OUT, D_IN), lambda i: (0, 0)),      # W_query
                    pl.BlockSpec((D_OUT, D_IN), lambda i: (0, 0)),      # W_query(rot-folded)
                    pl.BlockSpec((KV_DIM, D_IN), lambda i: (0, 0)),     # W_key
                    pl.BlockSpec((KV_DIM, D_IN), lambda i: (0, 0)),     # W_key(rot-folded)
                    pl.BlockSpec((KV_DIM, D_IN), lambda i: (0, 0)),     # W_value
                    pl.BlockSpec((D_OUT, D_OUT), lambda i: (0, 0)),     # out_proj
                    pl.BlockSpec((bb * T, D_OUT), lambda i: (0, 0)),    # cos_q (scaled)
                    pl.BlockSpec((bb * T, D_OUT), lambda i: (0, 0)),    # sin_q (scaled)
                    pl.BlockSpec((bb * T, KV_DIM), lambda i: (0, 0)),   # cos_k
                    pl.BlockSpec((bb * T, KV_DIM), lambda i: (0, 0)),   # sin_k
                    pl.BlockSpec((GROUP_SIZE * T, T), lambda i: (0, 0)),  # additive mask
                ],
                out_specs=pl.BlockSpec((bb, T, D_OUT), lambda i: (i, 0, 0)),
            ),
            compiler_params=pltpu.CompilerParams(
                dimension_semantics=("parallel",)),
        )(x, wq, wq_rot, wk, wk_rot, wv, wo, cos_q, sin_q, cos_k, sin_k, mask_add)

    return gqa_pallas


def gqa_reference(x, wq, wk, wv, wo, cos, sin, mask_bool):
    """Pure-JAX transcription of the torch forward, for verification."""
    b, t, _ = x.shape
    q = x @ wq.T
    k = x @ wk.T
    v = x @ wv.T
    q = q.reshape(b, t, NUM_HEADS, HEAD_DIM).transpose(0, 2, 1, 3)
    k = k.reshape(b, t, NUM_KV_GROUPS, HEAD_DIM).transpose(0, 2, 1, 3)
    v = v.reshape(b, t, NUM_KV_GROUPS, HEAD_DIM).transpose(0, 2, 1, 3)

    def rope4(z):
        x1 = z[..., :HEAD_DIM // 2]
        x2 = z[..., HEAD_DIM // 2:]
        rot = jnp.concatenate([-x2, x1], axis=-1)
        return z * cos[None, None, :t] + rot * sin[None, None, :t]

    k = rope4(k)
    q = rope4(q)
    k = jnp.repeat(k, GROUP_SIZE, axis=1)
    v = jnp.repeat(v, GROUP_SIZE, axis=1)
    s = q @ jnp.swapaxes(k, 2, 3)
    s = jnp.where(mask_bool[None, None, :t, :t], -jnp.inf, s)
    w = jax.nn.softmax(s / math.sqrt(HEAD_DIM), axis=-1)
    ctx = (w @ v).transpose(0, 2, 1, 3).reshape(b, t, D_OUT)
    return ctx @ wo.T


if __name__ == "__main__":
    key = jax.random.PRNGKey(0)
    kx, kq, kk, kv, ko = jax.random.split(key, 5)

    x = jax.random.normal(kx, (B, T, D_IN), jnp.float32)
    wq = jax.random.normal(kq, (D_OUT, D_IN), jnp.float32) * 0.05
    wk = jax.random.normal(kk, (KV_DIM, D_IN), jnp.float32) * 0.05
    wv = jax.random.normal(kv, (KV_DIM, D_IN), jnp.float32) * 0.05
    wo = jax.random.normal(ko, (D_OUT, D_OUT), jnp.float32) * 0.05

    # Standard RoPE tables, shape (T, HEAD_DIM) as the torch module expects.
    pos = jnp.arange(T, dtype=jnp.float32)[:, None]
    inv_freq = 1.0 / (10000.0 ** (jnp.arange(0, HEAD_DIM, 2, dtype=jnp.float32)
                                  / HEAD_DIM))
    angles = pos * inv_freq[None, :]
    angles = jnp.concatenate([angles, angles], axis=-1)
    cos = jnp.cos(angles)
    sin = jnp.sin(angles)

    # Causal mask: True above the diagonal (= masked_fill with -inf).
    mask_bool = jnp.triu(jnp.ones((T, T), dtype=bool), k=1)

    # Grid strategy: whole batch in one step on 1-TC chips (v5e/v6e);
    # batch-parallel grid on v7x (2 TCs/chip).
    BATCH_BLOCK = B if _tensorcores_per_chip() == 1 else 1
    gqa_pallas = make_gqa_call(BATCH_BLOCK)

    (wq_rot, wk_rot, cos_q, sin_q, cos_k, sin_k,
     mask_add) = prepare_constants(wq, wk, cos, sin, mask_bool, BATCH_BLOCK)

    out = gqa_pallas(x, wq, wq_rot, wk, wk_rot, wv, wo,
                     cos_q, sin_q, cos_k, sin_k, mask_add)
    jax.block_until_ready(out)

    ref = gqa_reference(x, wq, wk, wv, wo, cos, sin, mask_bool)
    assert out.shape == (B, T, D_OUT)
    max_err = float(jnp.max(jnp.abs(out - ref)))
    assert jnp.allclose(out, ref, atol=1e-4, rtol=1e-4), f"max_err={max_err}"
    print("KERNEL_OK")
</pallas_src>

<mosaic_0001>
module attributes {stable_mosaic.version = 11 : i64} {
  func.func @gqa_kernel(%arg0: i32, %arg1: memref<2x8x32xf32, #tpu.memory_space<vmem>>, %arg2: memref<64x32xf32, #tpu.memory_space<vmem>>, %arg3: memref<64x32xf32, #tpu.memory_space<vmem>>, %arg4: memref<32x32xf32, #tpu.memory_space<vmem>>, %arg5: memref<32x32xf32, #tpu.memory_space<vmem>>, %arg6: memref<32x32xf32, #tpu.memory_space<vmem>>, %arg7: memref<64x64xf32, #tpu.memory_space<vmem>>, %arg8: memref<16x64xf32, #tpu.memory_space<vmem>>, %arg9: memref<16x64xf32, #tpu.memory_space<vmem>>, %arg10: memref<16x32xf32, #tpu.memory_space<vmem>>, %arg11: memref<16x32xf32, #tpu.memory_space<vmem>>, %arg12: memref<16x8xf32, #tpu.memory_space<vmem>>, %arg13: memref<2x8x64xf32, #tpu.memory_space<vmem>>) attributes {dimension_semantics = [#tpu.dimension_semantics<parallel>], iteration_bounds = array<i64: 1>, scalar_prefetch = 0 : i64, scratch_operands = 0 : i64, tpu.core_type = #tpu.core_type<tc>, window_params = [{transform_indices = @transform_0, window_bounds = array<i64: 2, 8, 32>}, {pipeline_mode = #tpu.pipeline_mode<synchronous>, transform_indices = @transform_1, window_bounds = array<i64: 64, 32>}, {pipeline_mode = #tpu.pipeline_mode<synchronous>, transform_indices = @transform_2, window_bounds = array<i64: 64, 32>}, {pipeline_mode = #tpu.pipeline_mode<synchronous>, transform_indices = @transform_3, window_bounds = array<i64: 32, 32>}, {pipeline_mode = #tpu.pipeline_mode<synchronous>, transform_indices = @transform_4, window_bounds = array<i64: 32, 32>}, {pipeline_mode = #tpu.pipeline_mode<synchronous>, transform_indices = @transform_5, window_bounds = array<i64: 32, 32>}, {pipeline_mode = #tpu.pipeline_mode<synchronous>, transform_indices = @transform_6, window_bounds = array<i64: 64, 64>}, {pipeline_mode = #tpu.pipeline_mode<synchronous>, transform_indices = @transform_7, window_bounds = array<i64: 16, 64>}, {pipeline_mode = #tpu.pipeline_mode<synchronous>, transform_indices = @transform_8, window_bounds = array<i64: 16, 64>}, {pipeline_mode = #tpu.pipeline_mode<synchronous>, transform_indices = @transform_9, window_bounds = array<i64: 16, 32>}, {pipeline_mode = #tpu.pipeline_mode<synchronous>, transform_indices = @transform_10, window_bounds = array<i64: 16, 32>}, {pipeline_mode = #tpu.pipeline_mode<synchronous>, transform_indices = @transform_11, window_bounds = array<i64: 16, 8>}, {transform_indices = @transform_12, window_bounds = array<i64: 2, 8, 64>}]} {
    %c0 = arith.constant 0 : index
    %c0_0 = arith.constant 0 : index
    %c0_1 = arith.constant 0 : index
    %0 = vector.load %arg1[%c0, %c0_0, %c0_1] : memref<2x8x32xf32, #tpu.memory_space<vmem>>, vector<2x8x32xf32>
    %1 = vector.shape_cast %0 : vector<2x8x32xf32> to vector<16x32xf32>
    %c0_2 = arith.constant 0 : index
    %c0_3 = arith.constant 0 : index
    %2 = vector.load %arg2[%c0_2, %c0_3] : memref<64x32xf32, #tpu.memory_space<vmem>>, vector<64x32xf32>
    %cst = arith.constant dense<0.000000e+00> : vector<16x64xf32>
    %3 = tpu.matmul %1, %2, %cst {dimension_numbers = #tpu.dot_dimension_numbers<[1], [1], [0], [0], [0, 0, 1, 0], [], []>} : vector<16x32xf32>, vector<64x32xf32>, vector<16x64xf32> -> vector<16x64xf32>
    %c0_4 = arith.constant 0 : index
    %c0_5 = arith.constant 0 : index
    %4 = vector.load %arg3[%c0_4, %c0_5] : memref<64x32xf32, #tpu.memory_space<vmem>>, vector<64x32xf32>
    %cst_6 = arith.constant dense<0.000000e+00> : vector<16x64xf32>
    %5 = tpu.matmul %1, %4, %cst_6 {dimension_numbers = #tpu.dot_dimension_numbers<[1], [1], [0], [0], [0, 0, 1, 0], [], []>} : vector<16x32xf32>, vector<64x32xf32>, vector<16x64xf32> -> vector<16x64xf32>
    %c0_7 = arith.constant 0 : index
    %c0_8 = arith.constant 0 : index
    %6 = vector.load %arg4[%c0_7, %c0_8] : memref<32x32xf32, #tpu.memory_space<vmem>>, vector<32x32xf32>
    %cst_9 = arith.constant dense<0.000000e+00> : vector<16x32xf32>
    %7 = tpu.matmul %1, %6, %cst_9 {dimension_numbers = #tpu.dot_dimension_numbers<[1], [1], [0], [0], [0, 0, 1, 0], [], []>} : vector<16x32xf32>, vector<32x32xf32>, vector<16x32xf32> -> vector<16x32xf32>
    %c0_10 = arith.constant 0 : index
    %c0_11 = arith.constant 0 : index
    %8 = vector.load %arg5[%c0_10, %c0_11] : memref<32x32xf32, #tpu.memory_space<vmem>>, vector<32x32xf32>
    %cst_12 = arith.constant dense<0.000000e+00> : vector<16x32xf32>
    %9 = tpu.matmul %1, %8, %cst_12 {dimension_numbers = #tpu.dot_dimension_numbers<[1], [1], [0], [0], [0, 0, 1, 0], [], []>} : vector<16x32xf32>, vector<32x32xf32>, vector<16x32xf32> -> vector<16x32xf32>
    %c0_13 = arith.constant 0 : index
    %c0_14 = arith.constant 0 : index
    %10 = vector.load %arg6[%c0_13, %c0_14] : memref<32x32xf32, #tpu.memory_space<vmem>>, vector<32x32xf32>
    %cst_15 = arith.constant dense<0.000000e+00> : vector<16x32xf32>
    %11 = tpu.matmul %1, %10, %cst_15 {dimension_numbers = #tpu.dot_dimension_numbers<[1], [1], [0], [0], [0, 0, 1, 0], [], []>} : vector<16x32xf32>, vector<32x32xf32>, vector<16x32xf32> -> vector<16x32xf32>
    %c0_16 = arith.constant 0 : index
    %c0_17 = arith.constant 0 : index
    %12 = vector.load %arg8[%c0_16, %c0_17] : memref<16x64xf32, #tpu.memory_space<vmem>>, vector<16x64xf32>
    %13 = arith.mulf %3, %12 : vector<16x64xf32>
    %c0_18 = arith.constant 0 : index
    %c0_19 = arith.constant 0 : index
    %14 = vector.load %arg9[%c0_18, %c0_19] : memref<16x64xf32, #tpu.memory_space<vmem>>, vector<16x64xf32>
    %15 = arith.mulf %5, %14 : vector<16x64xf32>
    %16 = arith.addf %13, %15 : vector<16x64xf32>
    %c0_20 = arith.constant 0 : index
    %c0_21 = arith.constant 0 : index
    %17 = vector.load %arg10[%c0_20, %c0_21] : memref<16x32xf32, #tpu.memory_space<vmem>>, vector<16x32xf32>
    %18 = arith.mulf %7, %17 : vector<16x32xf32>
    %c0_22 = arith.constant 0 : index
    %c0_23 = arith.constant 0 : index
    %19 = vector.load %arg11[%c0_22, %c0_23] : memref<16x32xf32, #tpu.memory_space<vmem>>, vector<16x32xf32>
    %20 = arith.mulf %9, %19 : vector<16x32xf32>
    %21 = arith.addf %18, %20 : vector<16x32xf32>
    %c0_24 = arith.constant 0 : index
    %c0_25 = arith.constant 0 : index
    %22 = vector.load %arg12[%c0_24, %c0_25] : memref<16x8xf32, #tpu.memory_space<vmem>>, vector<16x8xf32>
    %23 = vector.extract_strided_slice %21 {offsets = [0, 0], sizes = [8, 16], strides = [1, 1]} : vector<16x32xf32> to vector<8x16xf32>
    %24 = vector.extract_strided_slice %11 {offsets = [0, 0], sizes = [8, 16], strides = [1, 1]} : vector<16x32xf32> to vector<8x16xf32>
    %25 = vector.extract_strided_slice %16 {offsets = [0, 0], sizes = [8, 16], strides = [1, 1]} : vector<16x64xf32> to vector<8x16xf32>
    %26 = vector.extract_strided_slice %16 {offsets = [0, 16], sizes = [8, 16], strides = [1, 1]} : vector<16x64xf32> to vector<8x16xf32>
    %27 = tpu.concatenate %25, %26 in 0 : vector<8x16xf32>, vector<8x16xf32> -> vector<16x16xf32>
    %cst_26 = arith.constant dense<0.000000e+00> : vector<16x8xf32>
    %28 = tpu.matmul %27, %23, %cst_26 {dimension_numbers = #tpu.dot_dimension_numbers<[1], [1], [0], [0], [0, 0, 1, 0], [], []>} : vector<16x16xf32>, vector<8x16xf32>, vector<16x8xf32> -> vector<16x8xf32>
    %29 = arith.addf %28, %22 : vector<16x8xf32>
    %cst_27 = arith.constant dense<0xFF800000> : vector<16xf32>
    %30 = vector.multi_reduction <maximumf>, %29, %cst_27 [1] : vector<16x8xf32> to vector<16xf32>
    %31 = vector.shape_cast %30 : vector<16xf32> to vector<16x1xf32>
    %32 = vector.broadcast %31 : vector<16x1xf32> to vector<16x8xf32>
    %33 = arith.subf %29, %32 : vector<16x8xf32>
    %34 = math.exp %33 : vector<16x8xf32>
    %cst_28 = arith.constant dense<0.000000e+00> : vector<16xf32>
    %35 = vector.multi_reduction <add>, %34, %cst_28 [1] : vector<16x8xf32> to vector<16xf32>
    %36 = vector.shape_cast %35 : vector<16xf32> to vector<16x1xf32>
    %37 = vector.broadcast %36 : vector<16x1xf32> to vector<16x8xf32>
    %38 = arith.divf %34, %37 : vector<16x8xf32>
    %cst_29 = arith.constant dense<0.000000e+00> : vector<16x16xf32>
    %39 = tpu.matmul %38, %24, %cst_29 {dimension_numbers = #tpu.dot_dimension_numbers<[1], [0], [0], [1], [0, 0, 1, 1], [], []>} : vector<16x8xf32>, vector<8x16xf32>, vector<16x16xf32> -> vector<16x16xf32>
    %40 = vector.extract_strided_slice %39 {offsets = [0, 0], sizes = [8, 16], strides = [1, 1]} : vector<16x16xf32> to vector<8x16xf32>
    %41 = vector.extract_strided_slice %39 {offsets = [8, 0], sizes = [8, 16], strides = [1, 1]} : vector<16x16xf32> to vector<8x16xf32>
    %42 = vector.extract_strided_slice %21 {offsets = [0, 16], sizes = [8, 16], strides = [1, 1]} : vector<16x32xf32> to vector<8x16xf32>
    %43 = vector.extract_strided_slice %11 {offsets = [0, 16], sizes = [8, 16], strides = [1, 1]} : vector<16x32xf32> to vector<8x16xf32>
    %44 = vector.extract_strided_slice %16 {offsets = [0, 32], sizes = [8, 16], strides = [1, 1]} : vector<16x64xf32> to vector<8x16xf32>
    %45 = vector.extract_strided_slice %16 {offsets = [0, 48], sizes = [8, 16], strides = [1, 1]} : vector<16x64xf32> to vector<8x16xf32>
    %46 = tpu.concatenate %44, %45 in 0 : vector<8x16xf32>, vector<8x16xf32> -> vector<16x16xf32>
    %cst_30 = arith.constant dense<0.000000e+00> : vector<16x8xf32>
    %47 = tpu.matmul %46, %42, %cst_30 {dimension_numbers = #tpu.dot_dimension_numbers<[1], [1], [0], [0], [0, 0, 1, 0], [], []>} : vector<16x16xf32>, vector<8x16xf32>, vector<16x8xf32> -> vector<16x8xf32>
    %48 = arith.addf %47, %22 : vector<16x8xf32>
    %cst_31 = arith.constant dense<0xFF800000> : vector<16xf32>
    %49 = vector.multi_reduction <maximumf>, %48, %cst_31 [1] : vector<16x8xf32> to vector<16xf32>
    %50 = vector.shape_cast %49 : vector<16xf32> to vector<16x1xf32>
    %51 = vector.broadcast %50 : vector<16x1xf32> to vector<16x8xf32>
    %52 = arith.subf %48, %51 : vector<16x8xf32>
    %53 = math.exp %52 : vector<16x8xf32>
    %cst_32 = arith.constant dense<0.000000e+00> : vector<16xf32>
    %54 = vector.multi_reduction <add>, %53, %cst_32 [1] : vector<16x8xf32> to vector<16xf32>
    %55 = vector.shape_cast %54 : vector<16xf32> to vector<16x1xf32>
    %56 = vector.broadcast %55 : vector<16x1xf32> to vector<16x8xf32>
    %57 = arith.divf %53, %56 : vector<16x8xf32>
    %cst_33 = arith.constant dense<0.000000e+00> : vector<16x16xf32>
    %58 = tpu.matmul %57, %43, %cst_33 {dimension_numbers = #tpu.dot_dimension_numbers<[1], [0], [0], [1], [0, 0, 1, 1], [], []>} : vector<16x8xf32>, vector<8x16xf32>, vector<16x16xf32> -> vector<16x16xf32>
    %59 = vector.extract_strided_slice %58 {offsets = [0, 0], sizes = [8, 16], strides = [1, 1]} : vector<16x16xf32> to vector<8x16xf32>
    %60 = vector.extract_strided_slice %58 {offsets = [8, 0], sizes = [8, 16], strides = [1, 1]} : vector<16x16xf32> to vector<8x16xf32>
    %61 = tpu.concatenate %40, %41, %59, %60 in 1 : vector<8x16xf32>, vector<8x16xf32>, vector<8x16xf32>, vector<8x16xf32> -> vector<8x64xf32>
    %62 = vector.extract_strided_slice %21 {offsets = [8, 0], sizes = [8, 16], strides = [1, 1]} : vector<16x32xf32> to vector<8x16xf32>
    %63 = vector.extract_strided_slice %11 {offsets = [8, 0], sizes = [8, 16], strides = [1, 1]} : vector<16x32xf32> to vector<8x16xf32>
    %64 = vector.extract_strided_slice %16 {offsets = [8, 0], sizes = [8, 16], strides = [1, 1]} : vector<16x64xf32> to vector<8x16xf32>
    %65 = vector.extract_strided_slice %16 {offsets = [8, 16], sizes = [8, 16], strides = [1, 1]} : vector<16x64xf32> to vector<8x16xf32>
    %66 = tpu.concatenate %64, %65 in 0 : vector<8x16xf32>, vector<8x16xf32> -> vector<16x16xf32>
    %cst_34 = arith.constant dense<0.000000e+00> : vector<16x8xf32>
    %67 = tpu.matmul %66, %62, %cst_34 {dimension_numbers = #tpu.dot_dimension_numbers<[1], [1], [0], [0], [0, 0, 1, 0], [], []>} : vector<16x16xf32>, vector<8x16xf32>, vector<16x8xf32> -> vector<16x8xf32>
    %68 = arith.addf %67, %22 : vector<16x8xf32>
    %cst_35 = arith.constant dense<0xFF800000> : vector<16xf32>
    %69 = vector.multi_reduction <maximumf>, %68, %cst_35 [1] : vector<16x8xf32> to vector<16xf32>
    %70 = vector.shape_cast %69 : vector<16xf32> to vector<16x1xf32>
    %71 = vector.broadcast %70 : vector<16x1xf32> to vector<16x8xf32>
    %72 = arith.subf %68, %71 : vector<16x8xf32>
    %73 = math.exp %72 : vector<16x8xf32>
    %cst_36 = arith.constant dense<0.000000e+00> : vector<16xf32>
    %74 = vector.multi_reduction <add>, %73, %cst_36 [1] : vector<16x8xf32> to vector<16xf32>
    %75 = vector.shape_cast %74 : vector<16xf32> to vector<16x1xf32>
    %76 = vector.broadcast %75 : vector<16x1xf32> to vector<16x8xf32>
    %77 = arith.divf %73, %76 : vector<16x8xf32>
    %cst_37 = arith.constant dense<0.000000e+00> : vector<16x16xf32>
    %78 = tpu.matmul %77, %63, %cst_37 {dimension_numbers = #tpu.dot_dimension_numbers<[1], [0], [0], [1], [0, 0, 1, 1], [], []>} : vector<16x8xf32>, vector<8x16xf32>, vector<16x16xf32> -> vector<16x16xf32>
    %79 = vector.extract_strided_slice %78 {offsets = [0, 0], sizes = [8, 16], strides = [1, 1]} : vector<16x16xf32> to vector<8x16xf32>
    %80 = vector.extract_strided_slice %78 {offsets = [8, 0], sizes = [8, 16], strides = [1, 1]} : vector<16x16xf32> to vector<8x16xf32>
    %81 = vector.extract_strided_slice %21 {offsets = [8, 16], sizes = [8, 16], strides = [1, 1]} : vector<16x32xf32> to vector<8x16xf32>
    %82 = vector.extract_strided_slice %11 {offsets = [8, 16], sizes = [8, 16], strides = [1, 1]} : vector<16x32xf32> to vector<8x16xf32>
    %83 = vector.extract_strided_slice %16 {offsets = [8, 32], sizes = [8, 16], strides = [1, 1]} : vector<16x64xf32> to vector<8x16xf32>
    %84 = vector.extract_strided_slice %16 {offsets = [8, 48], sizes = [8, 16], strides = [1, 1]} : vector<16x64xf32> to vector<8x16xf32>
    %85 = tpu.concatenate %83, %84 in 0 : vector<8x16xf32>, vector<8x16xf32> -> vector<16x16xf32>
    %cst_38 = arith.constant dense<0.000000e+00> : vector<16x8xf32>
    %86 = tpu.matmul %85, %81, %cst_38 {dimension_numbers = #tpu.dot_dimension_numbers<[1], [1], [0], [0], [0, 0, 1, 0], [], []>} : vector<16x16xf32>, vector<8x16xf32>, vector<16x8xf32> -> vector<16x8xf32>
    %87 = arith.addf %86, %22 : vector<16x8xf32>
    %cst_39 = arith.constant dense<0xFF800000> : vector<16xf32>
    %88 = vector.multi_reduction <maximumf>, %87, %cst_39 [1] : vector<16x8xf32> to vector<16xf32>
    %89 = vector.shape_cast %88 : vector<16xf32> to vector<16x1xf32>
    %90 = vector.broadcast %89 : vector<16x1xf32> to vector<16x8xf32>
    %91 = arith.subf %87, %90 : vector<16x8xf32>
    %92 = math.exp %91 : vector<16x8xf32>
    %cst_40 = arith.constant dense<0.000000e+00> : vector<16xf32>
    %93 = vector.multi_reduction <add>, %92, %cst_40 [1] : vector<16x8xf32> to vector<16xf32>
    %94 = vector.shape_cast %93 : vector<16xf32> to vector<16x1xf32>
    %95 = vector.broadcast %94 : vector<16x1xf32> to vector<16x8xf32>
    %96 = arith.divf %92, %95 : vector<16x8xf32>
    %cst_41 = arith.constant dense<0.000000e+00> : vector<16x16xf32>
    %97 = tpu.matmul %96, %82, %cst_41 {dimension_numbers = #tpu.dot_dimension_numbers<[1], [0], [0], [1], [0, 0, 1, 1], [], []>} : vector<16x8xf32>, vector<8x16xf32>, vector<16x16xf32> -> vector<16x16xf32>
    %98 = vector.extract_strided_slice %97 {offsets = [0, 0], sizes = [8, 16], strides = [1, 1]} : vector<16x16xf32> to vector<8x16xf32>
    %99 = vector.extract_strided_slice %97 {offsets = [8, 0], sizes = [8, 16], strides = [1, 1]} : vector<16x16xf32> to vector<8x16xf32>
    %100 = tpu.concatenate %79, %80, %98, %99 in 1 : vector<8x16xf32>, vector<8x16xf32>, vector<8x16xf32>, vector<8x16xf32> -> vector<8x64xf32>
    %101 = tpu.concatenate %61, %100 in 0 : vector<8x64xf32>, vector<8x64xf32> -> vector<16x64xf32>
    %c0_42 = arith.constant 0 : index
    %c0_43 = arith.constant 0 : index
    %102 = vector.load %arg7[%c0_42, %c0_43] : memref<64x64xf32, #tpu.memory_space<vmem>>, vector<64x64xf32>
    %cst_44 = arith.constant dense<0.000000e+00> : vector<16x64xf32>
    %103 = tpu.matmul %101, %102, %cst_44 {dimension_numbers = #tpu.dot_dimension_numbers<[1], [1], [0], [0], [0, 0, 1, 0], [], []>} : vector<16x64xf32>, vector<64x64xf32>, vector<16x64xf32> -> vector<16x64xf32>
    %104 = vector.shape_cast %103 : vector<16x64xf32> to vector<2x8x64xf32>
    %c0_45 = arith.constant 0 : index
    %c0_46 = arith.constant 0 : index
    %c0_47 = arith.constant 0 : index
    %105 = vector.load %arg13[%c0_45, %c0_46, %c0_47] : memref<2x8x64xf32, #tpu.memory_space<vmem>>, vector<2x8x64xf32>
    tpu.vector_store %arg13[%c0_45, %c0_46, %c0_47], %104 {strides = array<i32>} : memref<2x8x64xf32, #tpu.memory_space<vmem>>, vector<2x8x64xf32>,
    return
  }
  func.func @transform_0(%arg0: i32) -> (i32, i32, i32) {
    %c0_i32 = arith.constant 0 : i32
    %c0_i32_0 = arith.constant 0 : i32
    %c0_i32_1 = arith.constant 0 : i32
    return %arg0, %c0_i32, %c0_i32_0 : i32, i32, i32
  }
  func.func @transform_1(%arg0: i32) -> (i32, i32) {
    %c0_i32 = arith.constant 0 : i32
    %c0_i32_0 = arith.constant 0 : i32
    %c0_i32_1 = arith.constant 0 : i32
    return %c0_i32, %c0_i32_0 : i32, i32
  }
  func.func @transform_2(%arg0: i32) -> (i32, i32) {
    %c0_i32 = arith.constant 0 : i32
    %c0_i32_0 = arith.constant 0 : i32
    %c0_i32_1 = arith.constant 0 : i32
    return %c0_i32, %c0_i32_0 : i32, i32
  }
  func.func @transform_3(%arg0: i32) -> (i32, i32) {
    %c0_i32 = arith.constant 0 : i32
    %c0_i32_0 = arith.constant 0 : i32
    %c0_i32_1 = arith.constant 0 : i32
    return %c0_i32, %c0_i32_0 : i32, i32
  }
  func.func @transform_4(%arg0: i32) -> (i32, i32) {
    %c0_i32 = arith.constant 0 : i32
    %c0_i32_0 = arith.constant 0 : i32
    %c0_i32_1 = arith.constant 0 : i32
    return %c0_i32, %c0_i32_0 : i32, i32
  }
  func.func @transform_5(%arg0: i32) -> (i32, i32) {
    %c0_i32 = arith.constant 0 : i32
    %c0_i32_0 = arith.constant 0 : i32
    %c0_i32_1 = arith.constant 0 : i32
    return %c0_i32, %c0_i32_0 : i32, i32
  }
  func.func @transform_6(%arg0: i32) -> (i32, i32) {
    %c0_i32 = arith.constant 0 : i32
    %c0_i32_0 = arith.constant 0 : i32
    %c0_i32_1 = arith.constant 0 : i32
    return %c0_i32, %c0_i32_0 : i32, i32
  }
  func.func @transform_7(%arg0: i32) -> (i32, i32) {
    %c0_i32 = arith.constant 0 : i32
    %c0_i32_0 = arith.constant 0 : i32
    %c0_i32_1 = arith.constant 0 : i32
    return %c0_i32, %c0_i32_0 : i32, i32
  }
  func.func @transform_8(%arg0: i32) -> (i32, i32) {
    %c0_i32 = arith.constant 0 : i32
    %c0_i32_0 = arith.constant 0 : i32
    %c0_i32_1 = arith.constant 0 : i32
    return %c0_i32, %c0_i32_0 : i32, i32
  }
  func.func @transform_9(%arg0: i32) -> (i32, i32) {
    %c0_i32 = arith.constant 0 : i32
    %c0_i32_0 = arith.constant 0 : i32
    %c0_i32_1 = arith.constant 0 : i32
    return %c0_i32, %c0_i32_0 : i32, i32
  }
  func.func @transform_10(%arg0: i32) -> (i32, i32) {
    %c0_i32 = arith.constant 0 : i32
    %c0_i32_0 = arith.constant 0 : i32
    %c0_i32_1 = arith.constant 0 : i32
    return %c0_i32, %c0_i32_0 : i32, i32
  }
  func.func @transform_11(%arg0: i32) -> (i32, i32) {
    %c0_i32 = arith.constant 0 : i32
    %c0_i32_0 = arith.constant 0 : i32
    %c0_i32_1 = arith.constant 0 : i32
    return %c0_i32, %c0_i32_0 : i32, i32
  }
  func.func @transform_12(%arg0: i32) -> (i32, i32, i32) {
    %c0_i32 = arith.constant 0 : i32
    %c0_i32_0 = arith.constant 0 : i32
    %c0_i32_1 = arith.constant 0 : i32
    return %arg0, %c0_i32, %c0_i32_0 : i32, i32, i32
  }
}

</mosaic_0001>

<bundles_post_ra>
// kernel: gqa_pallas.1
= control target key start
LH: loop header
LB: loop body
LE: loop exit
PB: predicated region body
PF: predicated region fallthrough
CT: control target
= control target key end

     0   :  { %17 = vsyncpa [#allocation3], 0  ;;  %s2446_s0 = inlined_call_operand.vmem [shape: f32[2,8,32], index: 0, kind: input, shape index: {}]   ;;  %s2447_s1 = inlined_call_operand.vmem [shape: f32[64,32], index: 1, kind: input, shape index: {}]   ;;  %s2448_s2 = inlined_call_operand.vmem [shape: f32[64,32], index: 2, kind: input, shape index: {}]   ;;  %s2449_s3 = inlined_call_operand.vmem [shape: f32[32,32], index: 3, kind: input, shape index: {}]   ;;  %s2450_s4 = inlined_call_operand.vmem [shape: f32[32,32], index: 4, kind: input, shape index: {}]   ;;  %s2451_s5 = inlined_call_operand.vmem [shape: f32[32,32], index: 5, kind: input, shape index: {}]   ;;  %s2452_s6 = inlined_call_operand.vmem [shape: f32[64,64], index: 6, kind: input, shape index: {}]   ;;  %s2453_s7 = inlined_call_operand.vmem [shape: f32[16,64], index: 7, kind: input, shape index: {}]   ;;  %s2454_s8 = inlined_call_operand.vmem [shape: f32[16,64], index: 8, kind: input, shape index: {}]   ;;  %s2455_s9 = inlined_call_operand.hbm [shape: f32[16,32], index: 9, kind: input, shape index: {}]   ;;  %s2456_s10 = inlined_call_operand.hbm [shape: f32[16,32], index: 10, kind: input, shape index: {}]   ;;  %s2457_s11 = inlined_call_operand.vmem [shape: f32[16,8], index: 11, kind: input, shape index: {}]   ;;  %s2458_s12 = inlined_call_operand.hbm [shape: f32[2,8,64], index: 12, kind: output, shape index: {}]  }
   0x1   :  { %18 = vsyncpa [#allocation6], 0 }
   0x2   :  { %19 = vsyncpa [#allocation4], 0  ;;  %s2011_s21 = smov [#allocation2]   ;;  %s1939_s25 = scalar_lea.hbm %s2455_s9, 256 }
   0x3   :  { %s43_s22 = sshll.u32 %s2011_s21, 4  ;;  %p1940_p0 = scmp.ne.s32.totalorder %s2455_s9, %s1939_s25  ;;  %s44_s22 = int_to_ptr.vmem [resolvable:$true] %s43_s22 }
   0x4   :  { %p1943_p1 = scmp.lt.u32.totalorder %s1939_s25, %s2455_s9 }
   0x6   :  { %p1945_p2 = pnand %p1943_p1, %p1940_p0 }
   0x8   :  { %1948 = shalt.err (!%p1945_p2)
}
   0x9   :  { %s1949_s30 = scalar_lea.vmem %s44_s22, 256  ;;  %p1954_p4 = scmp.lt.s32.totalorder %s44_s22, %s44_s22 }
   0xa   :  { %p1950_p3 = scmp.ne.s32.totalorder %s44_s22, %s1949_s30  ;;  %p1955_p5 = scmp.lt.s32.totalorder %s1949_s30, %s1949_s30 }
   0xc   :  { %p1956_p6 = por %p1955_p5, %p1954_p4 }
   0xe   :  { %p1957_p7 = pnand %p1956_p6, %p1950_p3 }
  0x10   :  { %1960 = shalt.err (!%p1957_p7)
}
  0x11   :  { %s2012_s13 = smov 128   ;;  %s2013_s14 = smov 8  }
  0x12   :  { %49 = dma.hbm_to_vmem [thread:$0]  %s2455_s9, 256, %s44_s22, [#allocation3], %s2012_s13, %s2012_s13, %s2013_s14  }
  0x13   :  { %s2014_s17 = smov [#allocation5]   ;;  %s1961_s21 = scalar_lea.hbm %s2456_s10, 256 }
  0x14   :  { %s55_s18 = sshll.u32 %s2014_s17, 4  ;;  %p1962_p8 = scmp.ne.s32.totalorder %s2456_s10, %s1961_s21  ;;  %s56_s18 = int_to_ptr.vmem [resolvable:$true] %s55_s18 }
  0x15   :  { %p1965_p9 = scmp.lt.u32.totalorder %s1961_s21, %s2456_s10 }
  0x17   :  { %p1967_p10 = pnand %p1965_p9, %p1962_p8 }
  0x19   :  { %1970 = shalt.err (!%p1967_p10)
}
  0x1a   :  { %s1971_s27 = scalar_lea.vmem %s56_s18, 256  ;;  %p1976_p12 = scmp.lt.s32.totalorder %s56_s18, %s56_s18 }
  0x1b   :  { %p1972_p11 = scmp.ne.s32.totalorder %s56_s18, %s1971_s27  ;;  %p1977_p13 = scmp.lt.s32.totalorder %s1971_s27, %s1971_s27 }
  0x1d   :  { %p1978_p0 = por %p1977_p13, %p1976_p12 }
  0x1f   :  { %p1979_p1 = pnand %p1978_p0, %p1972_p11 }
  0x21   :  { %1982 = shalt.err (!%p1979_p1)
}
  0x22   :  { %61 = dma.hbm_to_vmem [thread:$0]  %s2456_s10, 256, %s56_s18, [#allocation6], %s2012_s13, %s2012_s13, %s2013_s14  }
  0x23   :  { %2005 = dma.done.wait [#allocation3], 256  }
  0x24   :  { %2006 = vsyncadd [#allocation3], 4294967040 }
  0x25   :  { %2007 = dma.done.wait [#allocation6], 256  }
  0x26   :  { %2008 = vsyncadd [#allocation6], 4294967040  ;;  %vm80_vm0 = vcmask 261120   ;;  %v72_v1 = vld [vmem:[%s2447_s1] sm:$0xff]  ;;  %v73_v2 = vld [vmem:[%s2447_s1 + $0x8] sm:$0xff]  ;;  %vm591_vm2 = vcmask 130048  }
  0x27   :  { %vm2118_vm1 = vmpackc.low %vm80_vm0, %vm80_vm0  ;;  %v186_v3 = vld [vmem:[%s2448_s2] sm:$0xff]  ;;  %v1789_v4 = vpack.c.bf16 %v73_v2, %v72_v1  ;;  %v187_v5 = vld [vmem:[%s2448_s2 + $0x8] sm:$0xff]  ;;  %vm674_vm3 = vcmask 64512   ;;  %s2017_s20 = smov 16   ;;  %vm1393_vm4 = vcmask 523264   ;;  %s2018_s30 = smov 48  }
  0x28   :  { %v74_v6 = vld [vmem:[%s2447_s1 + $0x10] sm:$0xff]  ;;  %v75_v7 = vld [vmem:[%s2447_s1 + $0x18] sm:$0xff]  ;;  %v1813_v8 = vpack.c.bf16 %v187_v5, %v186_v3  ;;  %v70_v13 = vld [vmem:[%s2446_s0] sm:$0xff]  ;;  %s2019_s15 = smov 32   ;;  %vm986_vm6 = vcmask 392192  }
  0x29   :  { %v1795_v9 = vpack.c.bf16 %v75_v7, %v74_v6  ;;  %v188_v10 = vld [vmem:[%s2448_s2 + $0x10] sm:$0xff]  ;;  %v189_v11 = vld [vmem:[%s2448_s2 + $0x18] sm:$0xff]  ;;  %1791 = vmatprep.subr.msk.bf16.mxu0 %vm2118_vm1, %v1789_v4  ;;  %v76_v14 = vld [vmem:[%s2447_s1 + $0x20] sm:$0xff]  ;;  %1675 = vmatprep.mubr.msk.f32.mxu0 %vm80_vm0, %v70_v13 }
  0x2a   :  { %v1819_v12 = vpack.c.bf16 %v189_v11, %v188_v10  ;;  %1815 = vmatprep.subr.msk.bf16.mxu1 %vm2118_vm1, %v1813_v8  ;;  %1794 = vmatpush3.bf16.xpose.msk.msra.mxu0 %vm2118_vm1, %v1789_v4  ;;  %v77_v15 = vld [vmem:[%s2447_s1 + $0x28] sm:$0xff]  ;;  %v190_v16 = vld [vmem:[%s2448_s2 + $0x20] sm:$0xff]  ;;  %v78_v20 = vld [vmem:[%s2447_s1 + $0x30] sm:$0xff] }
  0x2b   :  { %1818 = vmatpush3.bf16.xpose.msk.msra.mxu1 %vm2118_vm1, %v1813_v8  ;;  %1797 = vmatprep.subr.msk.bf16.mxu0 %vm2118_vm1, %v1795_v9  ;;  %v191_v17 = vld [vmem:[%s2448_s2 + $0x28] sm:$0xff]  ;;  %v1801_v18 = vpack.c.bf16 %v77_v15, %v76_v14  ;;  %v79_v21 = vld [vmem:[%s2447_s1 + $0x38] sm:$0xff]  ;;  %v192_v22 = vld [vmem:[%s2448_s2 + $0x30] sm:$0xff] }
  0x2c   :  { %1821 = vmatprep.subr.msk.bf16.mxu1 %vm2118_vm1, %v1819_v12  ;;  %1694 = vmatprep.mubr.msk.f32.mxu1 %vm80_vm0, %v70_v13  ;;  %v1825_v19 = vpack.c.bf16 %v191_v17, %v190_v16  ;;  %v193_v23 = vld [vmem:[%s2448_s2 + $0x38] sm:$0xff]  ;;  %v1807_v24 = vpack.c.bf16 %v79_v21, %v78_v20  ;;  %v475_v26 = vld [vmem:[%s2451_s5] sm:$0xff]  ;;  %v476_v27 = vld [vmem:[%s2451_s5 + $0x8] sm:$0xff] }
  0x2d   :  { %v1831_v25 = vpack.c.bf16 %v193_v23, %v192_v22  ;;  %v293_v28 = vld [vmem:[%s2449_s3] sm:$0xff]  ;;  %v294_v29 = vld [vmem:[%s2449_s3 + $0x8] sm:$0xff]  ;;  %v1861_v30 = vpack.c.bf16 %v476_v27, %v475_v26  ;;  %v295_v32 = vld [vmem:[%s2449_s3 + $0x10] sm:$0xff] }
  0x2e   :  { %v1837_v31 = vpack.c.bf16 %v294_v29, %v293_v28  ;;  %v296_v33 = vld [vmem:[%s2449_s3 + $0x18] sm:$0xff]  ;;  %v477_v34 = vld [vmem:[%s2451_s5 + $0x10] sm:$0xff]  ;;  %v71_v36 = vld [vmem:[%s2446_s0 + $0x8] sm:$0xff] }
  0x2f   :  { %v478_v35 = vld [vmem:[%s2451_s5 + $0x18] sm:$0xff]  ;;  %v1843_v37 = vpack.c.bf16 %v296_v33, %v295_v32  ;;  %v384_v39 = vld [vmem:[%s2450_s4] sm:$0xff]  ;;  %v385_v40 = vld [vmem:[%s2450_s4 + $0x8] sm:$0xff] }
  0x30   :  { %v1867_v38 = vpack.c.bf16 %v478_v35, %v477_v34  ;;  %v1849_v41 = vpack.c.bf16 %v385_v40, %v384_v39  ;;  %v386_v42 = vld [vmem:[%s2450_s4 + $0x10] sm:$0xff]  ;;  %v387_v43 = vld [vmem:[%s2450_s4 + $0x18] sm:$0xff]  ;;  %v567_v45 = vld [vmem:[%s2453_s7 + $0x8] sm:$0xff] }
  0x31   :  { %v1855_v44 = vpack.c.bf16 %v387_v43, %v386_v42  ;;  %v571_v46 = vld [vmem:[%s2454_s8 + $0x8] sm:$0xff]  ;;  %v566_v47 = vld [vmem:[%s2453_s7] sm:$0xff]  ;;  %s2015_s7 = smov 112   ;;  %v581_v63 = vld [vmem:[#allocation5 + $0x8] sm:$0xff] }
  0x32   :  { %1800 = vmatpush3.bf16.xpose.msk.msra.mxu0 %vm2118_vm1, %v1795_v9  ;;  %v570_v49 = vld [vmem:[%s2454_s8] sm:$0xff]  ;;  %v577_v61 = vld [vmem:[#allocation2 + $0x8] sm:$0xff]  ;;  %v580_v1 = vld [vmem:[#allocation5] sm:$0xff] }
  0x33   :  { %1824 = vmatpush3.bf16.xpose.msk.msra.mxu1 %vm2118_vm1, %v1819_v12  ;;  %1803 = vmatprep.subr.msk.bf16.mxu0 %vm2118_vm1, %v1801_v18  ;;  %v576_v62 = vld [vmem:[#allocation2] sm:$0xff]  ;;  %v2304_v10 = vld [vmem:[%s2457_s11 + $0x8] sm:$0xff]  ;;  %vm2386_vm5 = vmpackc.low %vm1393_vm4, %vm1393_vm4 }
  0x34   :  { %1827 = vmatprep.subr.msk.bf16.mxu1 %vm2118_vm1, %v1825_v19  ;;  %v2309_v11 = vld [vmem:[%s2457_s11] sm:$0xff]  ;;  %s2016_s11 = smov 96  }
  0x3a   :  { %1806 = vmatpush3.bf16.xpose.msk.msra.mxu0 %vm2118_vm1, %v1801_v18 }
  0x3b   :  { %1830 = vmatpush3.bf16.xpose.msk.msra.mxu1 %vm2118_vm1, %v1825_v19  ;;  %1809 = vmatprep.subr.msk.bf16.mxu0 %vm2118_vm1, %v1807_v24 }
  0x3c   :  { %1833 = vmatprep.subr.msk.bf16.mxu1 %vm2118_vm1, %v1831_v25 }
  0x42   :  { %1812 = vmatpush3.bf16.xpose.msk.msra.mxu0 %vm2118_vm1, %v1807_v24 }
  0x43   :  { %1836 = vmatpush3.bf16.xpose.msk.msra.mxu1 %vm2118_vm1, %v1831_v25  ;;  %1863 = vmatprep.subr.msk.bf16.mxu0 %vm2118_vm1, %v1861_v30 }
  0x44   :  { %1839 = vmatprep.subr.msk.bf16.mxu1 %vm2118_vm1, %v1837_v31 }
  0x49   :  { %1676 = vmatmul.mubr.msk.f32.vlgmr.msra.gmra.mrb[0].mxu0 %vm80_vm0, %v71_v36 }
  0x4a   :  { %1695 = vmatmul.mubr.msk.f32.vlgmr.msra.gmra.mrb[0].mxu1 %vm80_vm0, %v71_v36  ;;  %1866 = vmatpush3.bf16.xpose.msk.msra.mxu0 %vm2118_vm1, %v1861_v30 }
  0x4b   :  { %1842 = vmatpush3.bf16.xpose.msk.msra.mxu1 %vm2118_vm1, %v1837_v31  ;;  %1705 = vmatprep.mubr.msk.f32.mxu1 %vm80_vm0, %v70_v13 }
  0x4c   :  { %1845 = vmatprep.subr.msk.bf16.mxu1 %vm2118_vm1, %v1843_v37  ;;  %1869 = vmatprep.subr.msk.bf16.mxu0 %vm2118_vm1, %v1867_v38 }
  0x4d   :  { %1727 = vmatprep.mubr.msk.f32.mxu0 %vm80_vm0, %v70_v13 }
  0x52   :  { %1872 = vmatpush3.bf16.xpose.msk.msra.mxu0 %vm2118_vm1, %v1867_v38 }
  0x53   :  { %1848 = vmatpush3.bf16.xpose.msk.msra.mxu1 %vm2118_vm1, %v1843_v37 }
  0x54   :  { %1851 = vmatprep.subr.msk.bf16.mxu1 %vm2118_vm1, %v1849_v41 }
  0x59   :  { %1728 = vmatmul.mubr.msk.f32.vlgmr.msra.gmra.mrb[2].mxu0 %vm80_vm0, %v71_v36 }
  0x5a   :  { %1706 = vmatmul.mubr.msk.f32.vlgmr.msra.gmra.mrb[2].mxu1 %vm80_vm0, %v71_v36 }
  0x5b   :  { %1854 = vmatpush3.bf16.xpose.msk.msra.mxu1 %vm2118_vm1, %v1849_v41  ;;  %1716 = vmatprep.mubr.msk.f32.mxu1 %vm80_vm0, %v70_v13 }
  0x5c   :  { %1857 = vmatprep.subr.msk.bf16.mxu1 %vm2118_vm1, %v1855_v44 }
  0x63   :  { %1860 = vmatpush3.bf16.xpose.msk.msra.mxu1 %vm2118_vm1, %v1855_v44 }
  0x6a   :  { %1717 = vmatmul.mubr.msk.f32.vlgmr.msra.gmra.mrb[4].mxu1 %vm80_vm0, %v71_v36 }
 0x11c   :  { %v1677_v48 = vpop.f32.mrb[0].mxu0 }
 0x11d   :  { %v569_v50 = vmul.f32 %v1677_v48, %v567_v45  ;;  %v1696_v51 = vpop.f32.mrb[0].mxu1  ;;  %v177_v52 = vpop.f32.mrb[1].mxu0 }
 0x11e   :  { %v573_v53 = vmul.f32 %v1696_v51, %v571_v46  ;;  %v568_v54 = vmul.f32 %v566_v47, %v177_v52  ;;  %v284_v55 = vpop.f32.mrb[1].mxu1 }
 0x11f   :  { %v572_v56 = vmul.f32 %v570_v49, %v284_v55 }
 0x120   :  { %v2290_v57 = vadd.f32 %v573_v53, %v569_v50 }
 0x121   :  { %v574_v58 = vadd.f32 %v572_v56, %v568_v54 }
 0x122   :  { %1752 = vmatprep.mubr.msk.f32.mxu0 %vm591_vm2, %v2290_v57 }
 0x123   :  { %589 = vrot.lane.b32.xlu0 %v574_v58, %s2015_s7  ;;  %1732 = vmatprep.mubr.msk.f32.mxu1 %vm591_vm2, %v574_v58 }
 0x12c   :  { %v2315_v18 = vpop.f32.mrb[2].mxu0 }
 0x12d   :  { %v1707_v59 = vpop.f32.mrb[2].mxu1  ;;  %v2317_v19 = vpop.f32.mrb[3].mxu0 }
 0x12e   :  { %v375_v60 = vpop.f32.mrb[3].mxu1  ;;  %v579_v0 = vmul.f32 %v1707_v59, %v577_v61 }
 0x12f   :  { %v578_v2 = vmul.f32 %v576_v62, %v375_v60 }
 0x13d   :  { %v1718_v3 = vpop.f32.mrb[4].mxu1 }
 0x13e   :  { %v583_v4 = vmul.f32 %v1718_v3, %v581_v63  ;;  %v466_v5 = vpop.f32.mrb[5].mxu1 }
 0x13f   :  { %v582_v6 = vmul.f32 %v580_v1, %v466_v5 }
 0x140   :  { %v585_v7 = vadd.f32 %v583_v4, %v579_v0 }
 0x141   :  { %v584_v8 = vadd.f32 %v582_v6, %v578_v2 }
 0x142   :  { %1750 = vmatprep.subr.msk.mxu0 %vm591_vm2, %v585_v7 }
 0x143   :  { %1730 = vmatprep.subr.msk.mxu1 %vm591_vm2, %v584_v8  ;;  %1751 = vmatpush3.xpose.msk.msra.mxu0 %vm591_vm2, %v585_v7 }
 0x144   :  { %1731 = vmatpush3.xpose.msk.msra.mxu1 %vm591_vm2, %v584_v8 }
 0x145   :  { %1735 = vmatprep.subr.mxu1 %v2317_v19 }
 0x195   :  { %v590_v9 = vpop.permute.xlu0 %589 }
 0x196   :  { %1733 = vmatmul.mubr.msk.f32.vlgmr.msra.gmra.mrb[6].mxu1 %vm591_vm2, %v590_v9 }
 0x197   :  { %1736 = vmatpush3.msra.mxu1 %v2317_v19 }
 0x269   :  { %v1734_v12 = vpop.f32.mrb[6].mxu1 }
 0x26a   :  { %v671_v13 = vadd.f32 %v1734_v12, %v2304_v10  ;;  %v665_v14 = vpop.f32.mrb[7].mxu1 }
 0x26b   :  { %v666_v15 = vadd.f32 %v665_v14, %v2309_v11 }
 0x26c   :  { %v678_v16 = vsel %vm674_vm3, %v671_v13, -inf }
 0x26d   :  { %679 = vmax.xlane.f32.xlu1 %v678_v16  ;;  %v675_v17 = vsel %vm674_vm3, %v666_v15, -inf }
 0x26e   :  { %676 = vmax.xlane.f32.xlu0 %v675_v17 }
 0x27e   :  { %989 = vrot.lane.b32.xlu1 %v2290_v57, %s2015_s7 }
 0x284   :  { %782 = vrot.lane.b32.xlu0 %v584_v8, %s2015_s7 }
 0x2fa   :  { %v680_v20 = vpop.xlane.xlu1 %679 }
 0x2fb   :  { %v682_v21 = vsub.f32 %v671_v13, %v680_v20  ;;  %v677_v22 = vpop.xlane.xlu0 %676 }
 0x2fc   :  { %v681_v23 = vsub.f32 %v666_v15, %v677_v22 }
 0x2fd   :  { %v685_v24 = vmul.f32 1.442695, %v682_v21 }
 0x2fe   :  { %v683_v25 = vmul.f32 1.442695, %v681_v23  ;;  %v990_v26 = vpop.permute.xlu1 %989 }
 0x2ff   :  { %1907 = vpow2.f32 %v685_v24  ;;  %1753 = vmatmul.mubr.msk.f32.vlgmr.msra.gmra.mrb[4].mxu0 %vm591_vm2, %v990_v26  ;;  %v783_v27 = vpop.permute.xlu0 %782 }
 0x300   :  { %1909 = vpow2.f32 %v683_v25  ;;  %1740 = vmatprep.subr.msk.mxu1 %vm591_vm2, %v783_v27 }
 0x309   :  { %v1908_v28 = vpop.eup %1907 }
 0x30a   :  { %v1910_v29 = vpop.eup %1909  ;;  %v690_v30 = vsel %vm674_vm3, %v1908_v28, 0.0 }
 0x30b   :  { %691 = vadd.xlane.f32.xlu0 %v690_v30  ;;  %v687_v31 = vsel %vm674_vm3, %v1910_v29, 0.0 }
 0x30c   :  { %688 = vadd.xlane.f32.xlu1 %v687_v31 }
 0x31d   :  { %778 = vrot.lane.b32.xlu1 %v574_v58, %s2016_s11 }
 0x321   :  { %780 = vrot.lane.b32.xlu0 %v590_v9, %s2016_s11 }
 0x325   :  { %1180 = vrot.lane.b32.xlu0 %v585_v7, %s2015_s7 }
 0x329   :  { %1176 = vrot.lane.b32.xlu0 %v2290_v57, %s2016_s11 }
 0x32d   :  { %1178 = vrot.lane.b32.xlu0 %v990_v26, %s2016_s11 }
 0x398   :  { %v692_v32 = vpop.xlane.xlu0 %691 }
 0x399   :  { %1911 = vrcp.f32 %v692_v32  ;;  %v689_v33 = vpop.xlane.xlu1 %688 }
 0x39a   :  { %1913 = vrcp.f32 %v689_v33 }
 0x39c   :  { %v781_v34 = vpop.permute.xlu0 %780 }
 0x39d   :  { %v779_v41 = vpop.permute.xlu1 %778 }
 0x3a0   :  { %v1181_v35 = vpop.permute.xlu0 %1180 }
 0x3a1   :  { %1760 = vmatprep.subr.msk.mxu0 %vm591_vm2, %v1181_v35 }
 0x3a2   :  { %1761 = vmatpush3.xpose.msk.msra.mxu0 %vm591_vm2, %v1181_v35 }
 0x3a3   :  { %v1912_v36 = vpop.eup %1911 }
 0x3a4   :  { %v1914_v37 = vpop.eup %1913  ;;  %v1177_v38 = vpop.permute.xlu0 %1176  ;;  %v696_v40 = vmul.f32 %v1912_v36, %v1908_v28 }
 0x3a5   :  { %1762 = vmatprep.mubr.msk.f32.mxu0 %vm591_vm2, %v1177_v38  ;;  %v694_v39 = vmul.f32 %v1914_v37, %v1910_v29 }
 0x3a7   :  { %1737 = vmatprep.mubr.msk.f32.mxu1 %vm674_vm3, %v694_v39 }
 0x3a8   :  { %v1179_v42 = vpop.permute.xlu0 %1178  ;;  %1738 = vmatmul.mubr.msk.f32.vlgmr.msra.gmra.mrb[8].mxu1 %vm674_vm3, %v696_v40 }
 0x3a9   :  { %1741 = vmatpush3.xpose.msk.msra.mxu1 %vm591_vm2, %v783_v27  ;;  %1742 = vmatprep.mubr.msk.f32.mxu1 %vm591_vm2, %v779_v41 }
 0x3aa   :  { %1763 = vmatmul.mubr.msk.f32.vlgmr.msra.gmra.mrb[6].mxu0 %vm591_vm2, %v1179_v42 }
 0x3ac   :  { %1743 = vmatmul.mubr.msk.f32.vlgmr.msra.gmra.mrb[10].mxu1 %vm591_vm2, %v781_v34 }
 0x3d2   :  { %v1754_v43 = vpop.f32.mrb[4].mxu0 }
 0x3d3   :  { %v1064_v44 = vpop.f32.mrb[5].mxu0  ;;  %v1070_v55 = vadd.f32 %v1754_v43, %v2304_v10 }
 0x3d4   :  { %v1065_v53 = vadd.f32 %v1064_v44, %v2309_v11 }
 0x3d5   :  { %v1076_v60 = vsel %vm674_vm3, %v1070_v55, -inf }
 0x3d6   :  { %v1073_v58 = vsel %vm674_vm3, %v1065_v53, -inf }
 0x47b   :  { %v2339_v45 = vpop.f32.mrb[8].mxu1 }
 0x47c   :  { %v2341_v46 = vpop.f32.mrb[9].mxu1 }
 0x47d   :  { %v1764_v47 = vpop.f32.mrb[6].mxu0 }
 0x47e   :  { %v1254_v48 = vpop.f32.mrb[7].mxu0  ;;  %v1260_v59 = vadd.f32 %v1764_v47, %v2304_v10 }
 0x47f   :  { %v1744_v49 = vpop.f32.mrb[10].mxu1  ;;  %v1255_v57 = vadd.f32 %v1254_v48, %v2309_v11 }
 0x480   :  { %v862_v50 = vadd.f32 %v1744_v49, %v2304_v10  ;;  %v856_v51 = vpop.f32.mrb[11].mxu1  ;;  %v1266_v62 = vsel %vm674_vm3, %v1260_v59, -inf }
 0x481   :  { %v857_v52 = vadd.f32 %v856_v51, %v2309_v11  ;;  %v1263_v61 = vsel %vm674_vm3, %v1255_v57, -inf  ;;  %v1385_v51 = vld [vmem:[%s2452_s6] sm:$0xff] }
 0x482   :  { %v868_v54 = vsel %vm674_vm3, %v862_v50, -inf }
 0x483   :  { %869 = vmax.xlane.f32.xlu0 %v868_v54  ;;  %v865_v56 = vsel %vm674_vm3, %v857_v52, -inf }
 0x484   :  { %866 = vmax.xlane.f32.xlu1 %v865_v56 }
 0x487   :  { %1074 = vmax.xlane.f32.xlu0 %v1073_v58  ;;  %v1390_v58 = vld [vmem:[%s2452_s6 + $0x28] sm:$0xff] }
 0x488   :  { %1077 = vmax.xlane.f32.xlu1 %v1076_v60  ;;  %v1391_v60 = vld [vmem:[%s2452_s6 + $0x30] sm:$0xff] }
 0x48b   :  { %1264 = vmax.xlane.f32.xlu0 %v1263_v61  ;;  %v1392_v61 = vld [vmem:[%s2452_s6 + $0x38] sm:$0xff] }
 0x48c   :  { %1267 = vmax.xlane.f32.xlu1 %v1266_v62  ;;  %v1891_v62 = vpack.c.bf16 %v1392_v61, %v1391_v60 }
 0x510   :  { %v870_v63 = vpop.xlane.xlu0 %869 }
 0x511   :  { %v867_v0 = vpop.xlane.xlu1 %866  ;;  %v872_v7 = vsub.f32 %v862_v50, %v870_v63 }
 0x512   :  { %v871_v5 = vsub.f32 %v857_v52, %v867_v0  ;;  %v1387_v52 = vld [vmem:[%s2452_s6 + $0x10] sm:$0xff] }
 0x513   :  { %v875_v15 = vmul.f32 1.442695, %v872_v7 }
 0x514   :  { %v1075_v1 = vpop.xlane.xlu0 %1074  ;;  %v873_v13 = vmul.f32 1.442695, %v871_v5 }
 0x515   :  { %v1079_v2 = vsub.f32 %v1065_v53, %v1075_v1  ;;  %v1078_v3 = vpop.xlane.xlu1 %1077 }
 0x516   :  { %v1080_v4 = vsub.f32 %v1070_v55, %v1078_v3  ;;  %v1388_v55 = vld [vmem:[%s2452_s6 + $0x18] sm:$0xff] }
 0x517   :  { %v1081_v6 = vmul.f32 1.442695, %v1079_v2  ;;  %v1879_v56 = vpack.c.bf16 %v1388_v55, %v1387_v52 }
 0x518   :  { %v1083_v8 = vmul.f32 1.442695, %v1080_v4  ;;  %v1265_v9 = vpop.xlane.xlu0 %1264 }
 0x519   :  { %1915 = vpow2.f32 %v1081_v6  ;;  %v1269_v10 = vsub.f32 %v1255_v57, %v1265_v9  ;;  %v1268_v11 = vpop.xlane.xlu1 %1267  ;;  %v1389_v57 = vld [vmem:[%s2452_s6 + $0x20] sm:$0xff] }
 0x51a   :  { %1917 = vpow2.f32 %v1083_v8  ;;  %v1270_v12 = vsub.f32 %v1260_v59, %v1268_v11  ;;  %v1885_v59 = vpack.c.bf16 %v1390_v58, %v1389_v57 }
 0x51b   :  { %v1271_v14 = vmul.f32 1.442695, %v1269_v10 }
 0x51c   :  { %v1273_v16 = vmul.f32 1.442695, %v1270_v12 }
 0x51d   :  { %1919 = vpow2.f32 %v1271_v14 }
 0x51e   :  { %1921 = vpow2.f32 %v1273_v16 }
 0x51f   :  { %1923 = vpow2.f32 %v873_v13 }
 0x520   :  { %1925 = vpow2.f32 %v875_v15 }
 0x523   :  { %v1916_v17 = vpop.eup %1915 }
 0x524   :  { %v1918_v20 = vpop.eup %1917  ;;  %v1085_v21 = vsel %vm674_vm3, %v1916_v17, 0.0 }
 0x525   :  { %1086 = vadd.xlane.f32.xlu0 %v1085_v21  ;;  %v1088_v22 = vsel %vm674_vm3, %v1918_v20, 0.0 }
 0x526   :  { %1089 = vadd.xlane.f32.xlu1 %v1088_v22 }
 0x527   :  { %v1920_v23 = vpop.eup %1919 }
 0x528   :  { %v1922_v24 = vpop.eup %1921  ;;  %v1275_v25 = vsel %vm674_vm3, %v1920_v23, 0.0 }
 0x529   :  { %v1924_v26 = vpop.eup %1923  ;;  %1276 = vadd.xlane.f32.xlu0 %v1275_v25  ;;  %v1278_v27 = vsel %vm674_vm3, %v1922_v24, 0.0 }
 0x52a   :  { %v1926_v28 = vpop.eup %1925  ;;  %1279 = vadd.xlane.f32.xlu1 %v1278_v27  ;;  %v877_v29 = vsel %vm674_vm3, %v1924_v26, 0.0 }
 0x52b   :  { %v880_v30 = vsel %vm674_vm3, %v1926_v28, 0.0 }
 0x52d   :  { %878 = vadd.xlane.f32.xlu0 %v877_v29 }
 0x52e   :  { %881 = vadd.xlane.f32.xlu1 %v880_v30 }
 0x53f   :  { %1286 = vrot.lane.b32.xlu1 %v2315_v18, %s2015_s7 }
 0x543   :  { %888 = vrot.lane.b32.xlu0 %v2317_v19, %s2015_s7  ;;  %973 = vrot.lane.b32.xlu1 %v2339_v45, %s2017_s20 }
 0x5b2   :  { %v1087_v31 = vpop.xlane.xlu0 %1086 }
 0x5b3   :  { %v1090_v32 = vpop.xlane.xlu1 %1089  ;;  %1927 = vrcp.f32 %v1087_v31 }
 0x5b6   :  { %v1277_v33 = vpop.xlane.xlu0 %1276 }
 0x5b7   :  { %v1280_v34 = vpop.xlane.xlu1 %1279 }
 0x5ba   :  { %v879_v35 = vpop.xlane.xlu0 %878 }
 0x5bb   :  { %1929 = vrcp.f32 %v879_v35  ;;  %v882_v36 = vpop.xlane.xlu1 %881 }
 0x5bc   :  { %1931 = vrcp.f32 %v882_v36 }
 0x5bd   :  { %1933 = vrcp.f32 %v1090_v32  ;;  %v1928_v19 = vpop.eup %1927 }
 0x5be   :  { %v889_v37 = vpop.permute.xlu0 %888  ;;  %1935 = vrcp.f32 %v1277_v33  ;;  %v1092_v43 = vmul.f32 %v1928_v19, %v1916_v17 }
 0x5bf   :  { %1745 = vmatprep.subr.mxu1 %v889_v37  ;;  %1937 = vrcp.f32 %v1280_v34  ;;  %v1287_v45 = vpop.permute.xlu1 %1286 }
 0x5c0   :  { %1746 = vmatpush3.msra.mxu1 %v889_v37 }
 0x5c1   :  { %1755 = vmatprep.subr.mxu1 %v2315_v18 }
 0x5c3   :  { %v974_v5 = vpop.permute.xlu1 %973 }
 0x5c4   :  { %v984_v7 = vsel %vm591_vm2, %v2341_v46, %v974_v5 }
 0x5c5   :  { %v1930_v38 = vpop.eup %1929 }
 0x5c6   :  { %v1932_v39 = vpop.eup %1931  ;;  %v884_v40 = vmul.f32 %v1930_v38, %v1924_v26 }
 0x5c7   :  { %v886_v41 = vmul.f32 %v1932_v39, %v1926_v28  ;;  %v1934_v42 = vpop.eup %1933 }
 0x5c8   :  { %1747 = vmatprep.mubr.msk.f32.mxu1 %vm674_vm3, %v884_v40  ;;  %v1936_v44 = vpop.eup %1935  ;;  %v1094_v47 = vmul.f32 %v1934_v42, %v1918_v20 }
 0x5c9   :  { %1748 = vmatmul.mubr.msk.f32.vlgmr.msra.gmra.mrb[12].mxu1 %vm674_vm3, %v886_v41  ;;  %v1938_v48 = vpop.eup %1937  ;;  %v1282_v49 = vmul.f32 %v1936_v44, %v1920_v23 }
 0x5ca   :  { %1756 = vmatpush3.msra.mxu1 %v2315_v18  ;;  %1757 = vmatprep.mubr.msk.f32.mxu1 %vm674_vm3, %v1092_v43  ;;  %v1284_v50 = vmul.f32 %v1938_v48, %v1922_v24  ;;  %v1386_v18 = vld [vmem:[%s2452_s6 + $0x8] sm:$0xff]  ;;  %s2020_s6 = smov [#allocation7]  }
 0x5cb   :  { %1765 = vmatprep.subr.mxu1 %v1287_v45  ;;  %v1873_v53 = vpack.c.bf16 %v1386_v18, %v1385_v51  ;;  %s1506_s10 = sshll.u32 %s2020_s6, 4  ;;  %s1507_s10 = int_to_ptr.vmem [resolvable:$true] %s1506_s10 }
 0x5cc   :  { %s1983_s16 = scalar_lea.vmem %s1507_s10, 256  ;;  %p1988_p3 = scmp.lt.s32.totalorder %s1507_s10, %s1507_s10 }
 0x5cd   :  { %1758 = vmatmul.mubr.msk.f32.vlgmr.msra.gmra.mrb[14].mxu1 %vm674_vm3, %v1094_v47  ;;  %1875 = vmatprep.subr.msk.bf16.mxu0 %vm2386_vm5, %v1873_v53  ;;  %p1984_p2 = scmp.ne.s32.totalorder %s1507_s10, %s1983_s16  ;;  %p1989_p4 = scmp.lt.s32.totalorder %s1983_s16, %s1983_s16 }
 0x5ce   :  { %1766 = vmatpush3.msra.mxu1 %v1287_v45  ;;  %1767 = vmatprep.mubr.msk.f32.mxu1 %vm674_vm3, %v1282_v49 }
 0x5cf   :  { %1878 = vmatpush3.bf16.xpose.msk.msra.mxu0 %vm2386_vm5, %v1873_v53  ;;  %p1990_p5 = por %p1989_p4, %p1988_p3 }
 0x5d0   :  { %1881 = vmatprep.subr.msk.bf16.mxu0 %vm2386_vm5, %v1879_v56 }
 0x5d1   :  { %1768 = vmatmul.mubr.msk.f32.vlgmr.msra.gmra.mrb[16].mxu1 %vm674_vm3, %v1284_v50  ;;  %p1991_p6 = pnand %p1990_p5, %p1984_p2 }
 0x5d7   :  { %1884 = vmatpush3.bf16.xpose.msk.msra.mxu0 %vm2386_vm5, %v1879_v56 }
 0x5d8   :  { %1887 = vmatprep.subr.msk.bf16.mxu0 %vm2386_vm5, %v1885_v59 }
 0x5df   :  { %1890 = vmatpush3.bf16.xpose.msk.msra.mxu0 %vm2386_vm5, %v1885_v59 }
 0x5e0   :  { %1893 = vmatprep.subr.msk.bf16.mxu0 %vm2386_vm5, %v1891_v62 }
 0x5e7   :  { %1896 = vmatpush3.bf16.xpose.msk.msra.mxu0 %vm2386_vm5, %v1891_v62 }
 0x69c   :  { %v1749_v63 = vpop.f32.mrb[12].mxu1 }
 0x69d   :  { %981 = vrot.lane.b32.xlu0 %v1749_v63, %s2018_s30  ;;  %v963_v0 = vpop.f32.mrb[13].mxu1 }
 0x6a0   :  { %v1759_v1 = vpop.f32.mrb[14].mxu1 }
 0x6a1   :  { %977 = vrot.lane.b32.xlu0 %v963_v0, %s2019_s15  ;;  %1371 = vrot.lane.b32.xlu1 %v1759_v1, %s2017_s20  ;;  %v1167_v2 = vpop.f32.mrb[15].mxu1 }
 0x6a4   :  { %v1769_v3 = vpop.f32.mrb[16].mxu1 }
 0x6a5   :  { %1379 = vrot.lane.b32.xlu0 %v1769_v3, %s2018_s30  ;;  %v1361_v4 = vpop.f32.mrb[17].mxu1 }
 0x6a6   :  { %1375 = vrot.lane.b32.xlu1 %v1361_v4, %s2019_s15 }
 0x70f   :  { %v982_v6 = vpop.permute.xlu0 %981 }
 0x713   :  { %v978_v8 = vpop.permute.xlu0 %977  ;;  %v1372_v9 = vpop.permute.xlu1 %1371 }
 0x714   :  { %v985_v10 = vsel %vm80_vm0, %v984_v7, %v978_v8  ;;  %v1382_v12 = vsel %vm591_vm2, %v1167_v2, %v1372_v9 }
 0x715   :  { %v987_v11 = vsel %vm986_vm6, %v985_v10, %v982_v6 }
 0x716   :  { %1786 = vmatprep.mubr.msk.f32.mxu0 %vm1393_vm4, %v987_v11 }
 0x717   :  { %v1380_v14 = vpop.permute.xlu0 %1379 }
 0x718   :  { %v1376_v13 = vpop.permute.xlu1 %1375 }
 0x719   :  { %v1383_v15 = vsel %vm80_vm0, %v1382_v12, %v1376_v13 }
 0x71a   :  { %v1384_v16 = vsel %vm986_vm6, %v1383_v15, %v1380_v14 }
 0x71b   :  { %1787 = vmatmul.mubr.msk.f32.vlgmr.msra.gmra.mrb[8].mxu0 %vm1393_vm4, %v1384_v16 }
 0x7ee   :  { %v1788_v17 = vpop.f32.mrb[8].mxu0 }
 0x7ef   :  { %1500 = vst.msk [vmem:[#allocation7 + $0x8] sm:$0xff] %vm1393_vm4, %v1788_v17  ;;  %v1490_v46 = vpop.f32.mrb[9].mxu0 }
 0x7f0   :  { %1499 = vst.msk [vmem:[#allocation7] sm:$0xff] %vm1393_vm4, %v1490_v46 }
 0x7f1   :  { %1994 = shalt.err (!%p1991_p6)
}
 0x7f2   :  { %s1995_s17 = scalar_lea.hbm %s2458_s12, 256 }
 0x7f3   :  { %p1996_p7 = scmp.ne.s32.totalorder %s2458_s12, %s1995_s17  ;;  %p1999_p8 = scmp.lt.u32.totalorder %s1995_s17, %s2458_s12 }
 0x7f5   :  { %p2001_p9 = pnand %p1999_p8, %p1996_p7 }
 0x7f7   :  { %2004 = shalt.err (!%p2001_p9)
}
 0x7f8   :  { %1512 = dma.vmem_to_hbm [thread:$0]  %s1507_s10, 256, %s2458_s12, [#allocation4], %s2012_s13, %s2012_s13, %s2013_s14  }
 0x7f9   :  { %2009 = dma.done.wait [#allocation4], 256  }
 0x7fa   :  { %2010 = vsyncadd [#allocation4], 4294967040 }
 0x7fb   :  { %1516 = vsyncpa [#allocation3], 1 }
 0x7fc   :  { %1517 = vsyncpa [#allocation6], 1 }
 0x7fd   :  { %1518 = vsyncpa [#allocation4], 1 }

</bundles_post_ra>
